<compile_context>
chip_gen: v6e
topology: v6e:2x2x1
jax: 0.10.0
libtpu: 0.0.40
codegen_flags: <defaults>
</compile_context>

<pallas_src>
import jax
import jax.numpy as jnp
from jax.experimental import pallas as pl
from jax.experimental.pallas import tpu as pltpu


# ----------------------------- Pallas kernel -------------------------------


def segcl_fused_kernel(x_ref, w1_ref, b1_ref, w2_ref, b2_ref, adj_hbm,
                       out_ref, adj_vmem, ha_vmem, sem):
    # Grid axis 0 = row block of (adj rows / outputs).  x / weights are
    # replicated per step; the MLP is tiny so recomputing full h_a per core is
    # cheaper than cross-core communication.
    i = pl.program_id(0)
    tile_rows = out_ref.shape[0]
    row0 = pl.multiple_of(i * tile_rows, tile_rows)

    # Kick off the adj row-block DMA immediately; it is only needed for the
    # final matmul, so it overlaps with both MLP matmuls below.
    adj_cp = pltpu.make_async_copy(
        adj_hbm.at[pl.ds(row0, tile_rows), :], adj_vmem, sem)
    adj_cp.start()

    # MLP: relu(x @ W1 + b1) @ W2 + b2.  bf16 operands on the MXU, f32
    # accumulation; bias add / ReLU in f32 on the VPU.
    h = jnp.dot(x_ref[...], w1_ref[...], preferred_element_type=jnp.float32)
    h = jnp.maximum(h + b1_ref[...], 0.0)
    h_a = jnp.dot(h.astype(jnp.bfloat16), w2_ref[...],
                  preferred_element_type=jnp.float32)
    h_a = h_a + b2_ref[...]               # full (N, H2) in f32
    ha_vmem[...] = h_a                    # keep full h_a for the row-block slice

    # Propagation: h_p[rows i] = adj[rows i, :] @ h_a (all rows).
    adj_cp.wait()                         # must complete before reading adj_vmem
    h_p = jnp.dot(adj_vmem[...], h_a.astype(jnp.bfloat16),
                  preferred_element_type=jnp.float32)

    # Pack [h_a_rows | h_p_rows] into one 2*H2-lane slab -> unmasked stores.
    ha_rows = ha_vmem[pl.ds(row0, tile_rows), :]
    out_ref[...] = jnp.concatenate([ha_rows, h_p], axis=-1).astype(out_ref.dtype)


# ------------------------------- wrapper ------------------------------------


def _num_row_blocks(n_nodes):
    """2-way row split only on v7x (2 TensorCores/chip).  Extra grid steps are
    pure overhead on the single-TC v5e/v6e, so keep a 1-step grid there."""
    try:
        kind = jax.devices()[0].device_kind.lower()
    except Exception:
        return 1
    if ("v7" in kind or "7x" in kind) and n_nodes % 2 == 0 and (n_nodes // 2) % 8 == 0:
        return 2
    return 1


def segcl_pallas(x, adj, w1, b1, w2, b2):
    n, n_in = x.shape
    h1 = w1.shape[1]
    h2 = w2.shape[1]
    out_dtype = x.dtype

    nr = _num_row_blocks(n)
    tile = n // nr

    # bf16 operands for the MXU (also halves the adj DMA bytes).  Biases stay f32.
    xb = x.astype(jnp.bfloat16)
    adjb = adj.astype(jnp.bfloat16)
    w1b = w1.astype(jnp.bfloat16)
    w2b = w2.astype(jnp.bfloat16)
    b1r = b1.reshape(1, h1).astype(jnp.float32)
    b2r = b2.reshape(1, h2).astype(jnp.float32)

    out_itemsize = jnp.dtype(out_dtype).itemsize
    flops = 2 * n * (n_in * h1 + h1 * h2 + n * h2)
    bytes_accessed = (2 * (xb.size + adjb.size + w1b.size + w2b.size)
                      + 4 * (b1r.size + b2r.size)
                      + n * 2 * h2 * out_itemsize)

    packed = pl.pallas_call(
        segcl_fused_kernel,
        out_shape=jax.ShapeDtypeStruct((n, 2 * h2), out_dtype),
        grid=(nr,),
        in_specs=[
            pl.BlockSpec((n, n_in), lambda i: (0, 0)),     # x (replicated)
            pl.BlockSpec((n_in, h1), lambda i: (0, 0)),    # W1
            pl.BlockSpec((1, h1), lambda i: (0, 0)),       # b1
            pl.BlockSpec((h1, h2), lambda i: (0, 0)),      # W2
            pl.BlockSpec((1, h2), lambda i: (0, 0)),       # b2
            pl.BlockSpec(memory_space=pl.ANY),             # adj: stays in HBM
        ],
        out_specs=pl.BlockSpec((tile, 2 * h2), lambda i: (i, 0)),
        scratch_shapes=[
            pltpu.VMEM((tile, n), jnp.bfloat16),   # adj row-block landing buffer
            pltpu.VMEM((n, h2), jnp.float32),      # full h_a (shared by both outputs)
            pltpu.SemaphoreType.DMA(()),
        ],
        compiler_params=pltpu.CompilerParams(
            dimension_semantics=("parallel",)),
        cost_estimate=pl.CostEstimate(flops=flops, transcendentals=0,
                                      bytes_accessed=bytes_accessed),
    )(xb, w1b, b1r, w2b, b2r, adjb)

    h_a = packed[:, :h2]
    h_p = packed[:, h2:]
    return h_a, h_p


@jax.jit
def segcl_forward(x, adj, w1, b1, w2, b2):
    # F.dropout is identity in eval mode -> no-op here.
    return segcl_pallas(x, adj, w1, b1, w2, b2)


# ---------------------------- parameter init --------------------------------


def xavier_uniform(key, fan_in, fan_out, dtype=jnp.float32):
    bound = (6.0 / (fan_in + fan_out)) ** 0.5
    # stored as (in, out) so the kernel can do x @ W
    return jax.random.uniform(key, (fan_in, fan_out), dtype,
                              minval=-bound, maxval=bound)


if __name__ == "__main__":
    # SEGCL(n_in=64, cfg=[128, 64]); graph with N=256 nodes.
    N, N_IN = 256, 64
    CFG = [128, 64]

    key = jax.random.PRNGKey(0)
    kx, kadj, kw1, kw2 = jax.random.split(key, 4)

    x = jax.random.normal(kx, (N, N_IN), jnp.float32)

    # deterministic dense "sparse" adjacency: random 0/1 mask, row-normalized
    adj_mask = (jax.random.uniform(kadj, (N, N)) < 0.1).astype(jnp.float32)
    adj_mask = adj_mask + jnp.eye(N, dtype=jnp.float32)
    adj = adj_mask / jnp.sum(adj_mask, axis=1, keepdims=True)

    w1 = xavier_uniform(kw1, N_IN, CFG[0])
    b1 = jnp.zeros((CFG[0],), jnp.float32)
    w2 = xavier_uniform(kw2, CFG[0], CFG[1])
    b2 = jnp.zeros((CFG[1],), jnp.float32)

    h_a, h_p = segcl_forward(x, adj, w1, b1, w2, b2)
    jax.block_until_ready((h_a, h_p))

    # reference check in plain JAX (f32).  Tolerances are relaxed because the
    # kernel feeds the MXU bf16 operands (f32 accumulation).
    h_a_ref = jnp.maximum(x @ w1 + b1, 0.0) @ w2 + b2
    h_p_ref = adj @ h_a_ref
    assert jnp.allclose(h_a, h_a_ref, atol=3e-2, rtol=3e-2)
    assert jnp.allclose(h_p, h_p_ref, atol=3e-2, rtol=3e-2)

    print("KERNEL_OK")
</pallas_src>

<mosaic_0001>
module attributes {stable_mosaic.version = 11 : i64} {
  func.func @segcl_fused_kernel(%arg0: i32, %arg1: memref<256x64xbf16, #tpu.memory_space<vmem>>, %arg2: memref<64x128xbf16, #tpu.memory_space<vmem>>, %arg3: memref<1x128xf32, #tpu.memory_space<vmem>>, %arg4: memref<128x64xbf16, #tpu.memory_space<vmem>>, %arg5: memref<1x64xf32, #tpu.memory_space<vmem>>, %arg6: memref<256x256xbf16, #tpu.memory_space<any>>, %arg7: memref<256x128xf32, #tpu.memory_space<vmem>>, %arg8: memref<256x256xbf16, #tpu.memory_space<vmem>>, %arg9: memref<256x64xf32, #tpu.memory_space<vmem>>, %arg10: memref<!tpu.dma_semaphore, #tpu.memory_space<semaphore_mem>>) attributes {dimension_semantics = [#tpu.dimension_semantics<parallel>], iteration_bounds = array<i64: 1>, scalar_prefetch = 0 : i64, scratch_operands = 3 : i64, tpu.core_type = #tpu.core_type<tc>, window_params = [{pipeline_mode = #tpu.pipeline_mode<synchronous>, transform_indices = @transform_0, window_bounds = array<i64: 256, 64>}, {pipeline_mode = #tpu.pipeline_mode<synchronous>, transform_indices = @transform_1, window_bounds = array<i64: 64, 128>}, {pipeline_mode = #tpu.pipeline_mode<synchronous>, transform_indices = @transform_2, window_bounds = array<i64: 1, 128>}, {pipeline_mode = #tpu.pipeline_mode<synchronous>, transform_indices = @transform_3, window_bounds = array<i64: 128, 64>}, {pipeline_mode = #tpu.pipeline_mode<synchronous>, transform_indices = @transform_4, window_bounds = array<i64: 1, 64>}, {}, {transform_indices = @transform_6, window_bounds = array<i64: 256, 128>}]} {
    %c256_i32 = arith.constant 256 : i32
    %0 = arith.muli %arg0, %c256_i32 : i32
    %1 = tpu.assume_multiple %0, 256 : i32
    %c0_i32 = arith.constant 0 : i32
    %2 = tpu.memref_slice %arg6[%1, %c0_i32] : memref<256x256xbf16, #tpu.memory_space<any>> -> memref<256x256xbf16, #tpu.memory_space<any>>
    tpu.enqueue_dma source(%2 : memref<256x256xbf16, #tpu.memory_space<any>>) target(%arg8 : memref<256x256xbf16, #tpu.memory_space<vmem>>) target_semaphore(%arg10 : memref<!tpu.dma_semaphore, #tpu.memory_space<semaphore_mem>>)
    %c0 = arith.constant 0 : index
    %c0_0 = arith.constant 0 : index
    %3 = vector.load %arg1[%c0, %c0_0] : memref<256x64xbf16, #tpu.memory_space<vmem>>, vector<256x64xbf16>
    %c0_1 = arith.constant 0 : index
    %c0_2 = arith.constant 0 : index
    %4 = vector.load %arg2[%c0_1, %c0_2] : memref<64x128xbf16, #tpu.memory_space<vmem>>, vector<64x128xbf16>
    %cst = arith.constant dense<0.000000e+00> : vector<256x128xf32>
    %5 = tpu.matmul %3, %4, %cst {dimension_numbers = #tpu.dot_dimension_numbers<[1], [0], [0], [1], [0, 0, 1, 1], [], []>} : vector<256x64xbf16>, vector<64x128xbf16>, vector<256x128xf32> -> vector<256x128xf32>
    %c0_3 = arith.constant 0 : index
    %c0_4 = arith.constant 0 : index
    %6 = vector.load %arg3[%c0_3, %c0_4] : memref<1x128xf32, #tpu.memory_space<vmem>>, vector<1x128xf32>
    %7 = vector.broadcast %6 : vector<1x128xf32> to vector<256x128xf32>
    %8 = arith.addf %5, %7 : vector<256x128xf32>
    %cst_5 = arith.constant 0.000000e+00 : f32
    %9 = vector.broadcast %cst_5 : f32 to vector<256x128xf32>
    %10 = arith.maximumf %8, %9 : vector<256x128xf32>
    %11 = arith.truncf %10 : vector<256x128xf32> to vector<256x128xbf16>
    %c0_6 = arith.constant 0 : index
    %c0_7 = arith.constant 0 : index
    %12 = vector.load %arg4[%c0_6, %c0_7] : memref<128x64xbf16, #tpu.memory_space<vmem>>, vector<128x64xbf16>
    %cst_8 = arith.constant dense<0.000000e+00> : vector<256x64xf32>
    %13 = tpu.matmul %11, %12, %cst_8 {dimension_numbers = #tpu.dot_dimension_numbers<[1], [0], [0], [1], [0, 0, 1, 1], [], []>} : vector<256x128xbf16>, vector<128x64xbf16>, vector<256x64xf32> -> vector<256x64xf32>
    %c0_9 = arith.constant 0 : index
    %c0_10 = arith.constant 0 : index
    %14 = vector.load %arg5[%c0_9, %c0_10] : memref<1x64xf32, #tpu.memory_space<vmem>>, vector<1x64xf32>
    %15 = vector.broadcast %14 : vector<1x64xf32> to vector<256x64xf32>
    %16 = arith.addf %13, %15 : vector<256x64xf32>
    %c0_11 = arith.constant 0 : index
    %c0_12 = arith.constant 0 : index
    %17 = vector.load %arg9[%c0_11, %c0_12] : memref<256x64xf32, #tpu.memory_space<vmem>>, vector<256x64xf32>
    tpu.vector_store %arg9[%c0_11, %c0_12], %16 {strides = array<i32>} : memref<256x64xf32, #tpu.memory_space<vmem>>, vector<256x64xf32>,
    %c0_i32_13 = arith.constant 0 : i32
    %18 = tpu.memref_slice %arg6[%1, %c0_i32_13] : memref<256x256xbf16, #tpu.memory_space<any>> -> memref<256x256xbf16, #tpu.memory_space<any>>
    tpu.wait_dma2 semaphore(%arg10 : memref<!tpu.dma_semaphore, #tpu.memory_space<semaphore_mem>>) src(%18 : memref<256x256xbf16, #tpu.memory_space<any>>) dst(%arg8 : memref<256x256xbf16, #tpu.memory_space<vmem>>)
    %c0_14 = arith.constant 0 : index
    %c0_15 = arith.constant 0 : index
    %19 = vector.load %arg8[%c0_14, %c0_15] : memref<256x256xbf16, #tpu.memory_space<vmem>>, vector<256x256xbf16>
    %20 = arith.truncf %16 : vector<256x64xf32> to vector<256x64xbf16>
    %cst_16 = arith.constant dense<0.000000e+00> : vector<256x64xf32>
    %21 = tpu.matmul %19, %20, %cst_16 {dimension_numbers = #tpu.dot_dimension_numbers<[1], [0], [0], [1], [0, 0, 1, 1], [], []>} : vector<256x256xbf16>, vector<256x64xbf16>, vector<256x64xf32> -> vector<256x64xf32>
    %22 = arith.index_cast %1 : i32 to index
    %c0_17 = arith.constant 0 : index
    %23 = vector.load %arg9[%22, %c0_17] : memref<256x64xf32, #tpu.memory_space<vmem>>, vector<256x64xf32>
    %24 = tpu.concatenate %23, %21 in 1 : vector<256x64xf32>, vector<256x64xf32> -> vector<256x128xf32>
    %c0_18 = arith.constant 0 : index
    %c0_19 = arith.constant 0 : index
    %25 = vector.load %arg7[%c0_18, %c0_19] : memref<256x128xf32, #tpu.memory_space<vmem>>, vector<256x128xf32>
    tpu.vector_store %arg7[%c0_18, %c0_19], %24 {strides = array<i32>} : memref<256x128xf32, #tpu.memory_space<vmem>>, vector<256x128xf32>,
    return
  }
  func.func @transform_0(%arg0: i32) -> (i32, i32) {
    %c0_i32 = arith.constant 0 : i32
    %c0_i32_0 = arith.constant 0 : i32
    %c0_i32_1 = arith.constant 0 : i32
    return %c0_i32, %c0_i32_0 : i32, i32
  }
  func.func @transform_1(%arg0: i32) -> (i32, i32) {
    %c0_i32 = arith.constant 0 : i32
    %c0_i32_0 = arith.constant 0 : i32
    %c0_i32_1 = arith.constant 0 : i32
    return %c0_i32, %c0_i32_0 : i32, i32
  }
  func.func @transform_2(%arg0: i32) -> (i32, i32) {
    %c0_i32 = arith.constant 0 : i32
    %c0_i32_0 = arith.constant 0 : i32
    %c0_i32_1 = arith.constant 0 : i32
    return %c0_i32, %c0_i32_0 : i32, i32
  }
  func.func @transform_3(%arg0: i32) -> (i32, i32) {
    %c0_i32 = arith.constant 0 : i32
    %c0_i32_0 = arith.constant 0 : i32
    %c0_i32_1 = arith.constant 0 : i32
    return %c0_i32, %c0_i32_0 : i32, i32
  }
  func.func @transform_4(%arg0: i32) -> (i32, i32) {
    %c0_i32 = arith.constant 0 : i32
    %c0_i32_0 = arith.constant 0 : i32
    %c0_i32_1 = arith.constant 0 : i32
    return %c0_i32, %c0_i32_0 : i32, i32
  }
  func.func @transform_6(%arg0: i32) -> (i32, i32) {
    %c0_i32 = arith.constant 0 : i32
    %c0_i32_0 = arith.constant 0 : i32
    return %arg0, %c0_i32 : i32, i32
  }
}

</mosaic_0001>

<bundles_post_ra>
// kernel: segcl_forward.1
= control target key start
LH: loop header
LB: loop body
LE: loop exit
PB: predicated region body
PF: predicated region fallthrough
CT: control target
= control target key end

     0   :  { %s2496_s0 = inlined_call_operand.vmem [shape: bf16[256,64], index: 0, kind: input, shape index: {}]   ;;  %s2497_s1 = inlined_call_operand.vmem [shape: bf16[64,128], index: 1, kind: input, shape index: {}]   ;;  %s2498_s2 = inlined_call_operand.vmem [shape: f32[1,128], index: 2, kind: input, shape index: {}]   ;;  %s2499_s3 = inlined_call_operand.vmem [shape: bf16[128,64], index: 3, kind: input, shape index: {}]   ;;  %s2500_s4 = inlined_call_operand.vmem [shape: f32[1,64], index: 4, kind: input, shape index: {}]   ;;  %s2501_s5 = inlined_call_operand.vmem [shape: bf16[256,256], index: 5, kind: input, shape index: {}]   ;;  %s2502_s6 = inlined_call_operand.vmem [shape: f32[256,128], index: 6, kind: output, shape index: {}]  }
   0x1   :  { %v1833_v0 = vld [vmem:[%s2501_s5] sm:$0xff]  ;;  %v1838_v1 = vld [vmem:[%s2501_s5 + $0x8] sm:$0xff]  ;;  %v1843_v2 = vld [vmem:[%s2501_s5 + $0x10] sm:$0xff] }
   0x2   :  { %v1848_v3 = vld [vmem:[%s2501_s5 + $0x18] sm:$0xff]  ;;  %v1853_v4 = vld [vmem:[%s2501_s5 + $0x20] sm:$0xff]  ;;  %v1858_v5 = vld [vmem:[%s2501_s5 + $0x28] sm:$0xff] }
   0x3   :  { %v1863_v6 = vld [vmem:[%s2501_s5 + $0x30] sm:$0xff]  ;;  %v1868_v7 = vld [vmem:[%s2501_s5 + $0x38] sm:$0xff]  ;;  %v1873_v8 = vld [vmem:[%s2501_s5 + $0x40] sm:$0xff] }
   0x4   :  { %v1878_v9 = vld [vmem:[%s2501_s5 + $0x48] sm:$0xff]  ;;  %v1883_v10 = vld [vmem:[%s2501_s5 + $0x50] sm:$0xff]  ;;  %v1888_v11 = vld [vmem:[%s2501_s5 + $0x58] sm:$0xff] }
   0x5   :  { %v1893_v12 = vld [vmem:[%s2501_s5 + $0x60] sm:$0xff]  ;;  %v1898_v13 = vld [vmem:[%s2501_s5 + $0x68] sm:$0xff]  ;;  %v1903_v14 = vld [vmem:[%s2501_s5 + $0x70] sm:$0xff] }
   0x6   :  { %2511 = vst [vmem:[#allocation7_spill] sm:$0xff] %v1893_v12  ;;  %2512 = vst [vmem:[#allocation8_spill] sm:$0xff] %v1898_v13  ;;  %v1908_v15 = vld [vmem:[%s2501_s5 + $0x78] sm:$0xff]  ;;  %v1913_v16 = vld [vmem:[%s2501_s5 + $0x80] sm:$0xff] }
   0x7   :  { %2513 = vst [vmem:[#allocation9_spill] sm:$0xff] %v1903_v14  ;;  %2514 = vst [vmem:[#allocation10_spill] sm:$0xff] %v1908_v15  ;;  %v1918_v17 = vld [vmem:[%s2501_s5 + $0x88] sm:$0xff]  ;;  %v1923_v18 = vld [vmem:[%s2501_s5 + $0x90] sm:$0xff] }
   0x8   :  { %2515 = vst [vmem:[#allocation11_spill] sm:$0xff] %v1913_v16  ;;  %2516 = vst [vmem:[#allocation12_spill] sm:$0xff] %v1918_v17  ;;  %v1928_v19 = vld [vmem:[%s2501_s5 + $0x98] sm:$0xff]  ;;  %v1933_v20 = vld [vmem:[%s2501_s5 + $0xa0] sm:$0xff] }
   0x9   :  { %v1938_v21 = vld [vmem:[%s2501_s5 + $0xa8] sm:$0xff]  ;;  %v1943_v22 = vld [vmem:[%s2501_s5 + $0xb0] sm:$0xff]  ;;  %v1948_v23 = vld [vmem:[%s2501_s5 + $0xb8] sm:$0xff] }
   0xa   :  { %v1953_v24 = vld [vmem:[%s2501_s5 + $0xc0] sm:$0xff]  ;;  %v1958_v25 = vld [vmem:[%s2501_s5 + $0xc8] sm:$0xff]  ;;  %v1963_v26 = vld [vmem:[%s2501_s5 + $0xd0] sm:$0xff] }
   0xb   :  { %v1968_v27 = vld [vmem:[%s2501_s5 + $0xd8] sm:$0xff]  ;;  %v1973_v28 = vld [vmem:[%s2501_s5 + $0xe0] sm:$0xff]  ;;  %v1978_v29 = vld [vmem:[%s2501_s5 + $0xe8] sm:$0xff] }
   0xc   :  { %v1983_v30 = vld [vmem:[%s2501_s5 + $0xf0] sm:$0xff]  ;;  %v1988_v31 = vld [vmem:[%s2501_s5 + $0xf8] sm:$0xff] }
   0xd   :  { %2517 = vst [vmem:[#allocation13_spill] sm:$0xff] %v1983_v30  ;;  %2518 = vst [vmem:[#allocation14_spill] sm:$0xff] %v1988_v31 }
   0xe   :  { %132 = vsyncadd [#allocation4], 4096  ;;  %v1764_v32 = vld [vmem:[%s2497_s1 + $0x18] sm:$0xff]   ;;  %v1765_v33 = vld [vmem:[%s2497_s1 + $0x10] sm:$0xff]   ;;  %vm284_vm0 = vcmask 523264  }
   0xf   :  { %1659 = vmatprep.subr.bf16.mxu0 %v1764_v32  ;;  %v1766_v34 = vld [vmem:[%s2497_s1 + $0x8] sm:$0xff]   ;;  %v1768_v35 = vld [vmem:[%s2496_s0] sm:$0xff]   ;;  %v1770_v38 = vld [vmem:[%s2496_s0 + $0x10] sm:$0xff]  }
  0x10   :  { %1660 = vmatpush3.bf16.msra.mxu0 %v1764_v32  ;;  %1667 = vmatprep.mubr.msk.bf16.mxu0 %vm284_vm0, %v1768_v35  ;;  %v1767_v36 = vld [vmem:[%s2497_s1] sm:$0xff]   ;;  %v1769_v37 = vld [vmem:[%s2496_s0 + $0x8] sm:$0xff]   ;;  %v1784_v39 = vld [vmem:[%s2499_s3 + $0x38] sm:$0xff]  }
  0x11   :  { %1661 = vmatprep.subr.bf16.mxu0 %v1765_v33  ;;  %v1785_v40 = vld [vmem:[%s2499_s3 + $0x30] sm:$0xff]   ;;  %v1771_v41 = vld [vmem:[%s2496_s0 + $0x18] sm:$0xff]   ;;  %1699 = vmatprep.subr.bf16.mxu1 %v1784_v39  ;;  %v1772_v42 = vld [vmem:[%s2496_s0 + $0x20] sm:$0xff]  }
  0x12   :  { %1700 = vmatpush3.bf16.msra.mxu1 %v1784_v39  ;;  %v1786_v43 = vld [vmem:[%s2499_s3 + $0x28] sm:$0xff]   ;;  %v1787_v44 = vld [vmem:[%s2499_s3 + $0x20] sm:$0xff]   ;;  %v1774_v46 = vld [vmem:[%s2496_s0 + $0x30] sm:$0xff]  }
  0x13   :  { %1701 = vmatprep.subr.bf16.mxu1 %v1785_v40  ;;  %v1773_v45 = vld [vmem:[%s2496_s0 + $0x28] sm:$0xff]   ;;  %v1788_v47 = vld [vmem:[%s2499_s3 + $0x18] sm:$0xff]   ;;  %v1776_v49 = vld [vmem:[%s2496_s0 + $0x40] sm:$0xff]  }
  0x14   :  { %1662 = vmatpush3.bf16.msra.mxu0 %v1765_v33  ;;  %v1775_v48 = vld [vmem:[%s2496_s0 + $0x38] sm:$0xff]   ;;  %v1777_v50 = vld [vmem:[%s2496_s0 + $0x48] sm:$0xff]   ;;  %v1778_v51 = vld [vmem:[%s2496_s0 + $0x50] sm:$0xff]  }
  0x15   :  { %1663 = vmatprep.subr.bf16.mxu0 %v1766_v34  ;;  %v1779_v52 = vld [vmem:[%s2496_s0 + $0x58] sm:$0xff]   ;;  %v1780_v53 = vld [vmem:[%s2496_s0 + $0x60] sm:$0xff]   ;;  %v1781_v54 = vld [vmem:[%s2496_s0 + $0x68] sm:$0xff]  }
  0x16   :  { %1702 = vmatpush3.bf16.msra.mxu1 %v1785_v40  ;;  %v1782_v55 = vld [vmem:[%s2496_s0 + $0x70] sm:$0xff]   ;;  %v1783_v56 = vld [vmem:[%s2496_s0 + $0x78] sm:$0xff]   ;;  %v1790_v58 = vld [vmem:[%s2499_s3 + $0x8] sm:$0xff]  }
  0x17   :  { %1703 = vmatprep.subr.bf16.mxu1 %v1786_v43  ;;  %v1789_v57 = vld [vmem:[%s2499_s3 + $0x10] sm:$0xff]   ;;  %v1791_v59 = vld [vmem:[%s2499_s3] sm:$0xff]  }
  0x18   :  { %1664 = vmatpush3.bf16.msra.mxu0 %v1766_v34  ;;  %v2093_v62 = vld [vmem:[%s2498_s2] ss:$0 sm:$0xff] }
  0x19   :  { %1665 = vmatprep.subr.bf16.mxu0 %v1767_v36 }
  0x1a   :  { %1704 = vmatpush3.bf16.msra.mxu1 %v1786_v43 }
  0x1b   :  { %1705 = vmatprep.subr.bf16.mxu1 %v1787_v44 }
  0x1c   :  { %1666 = vmatpush3.bf16.msra.mxu0 %v1767_v36 }
  0x1e   :  { %1706 = vmatpush3.bf16.msra.mxu1 %v1787_v44 }
  0x1f   :  { %1668 = vmatmul.mubr.msk.bf16.vlgmr.msra.gmra.mxu0 %vm284_vm0, %v1769_v37  ;;  %1707 = vmatprep.subr.bf16.mxu1 %v1788_v47 }
  0x20   :  { %1671 = vmatprep.mubr.msk.bf16.mxu0 %vm284_vm0, %v1770_v38 }
  0x22   :  { %1708 = vmatpush3.bf16.msra.mxu1 %v1788_v47 }
  0x23   :  { %1709 = vmatprep.subr.bf16.mxu1 %v1789_v57 }
  0x26   :  { %1710 = vmatpush3.bf16.msra.mxu1 %v1789_v57 }
  0x27   :  { %1672 = vmatmul.mubr.msk.bf16.gmra.mxu0 %vm284_vm0, %v1771_v41  ;;  %1711 = vmatprep.subr.bf16.mxu1 %v1790_v58 }
  0x28   :  { %1675 = vmatprep.mubr.msk.bf16.mxu0 %vm284_vm0, %v1772_v42 }
  0x2a   :  { %1712 = vmatpush3.bf16.msra.mxu1 %v1790_v58 }
  0x2b   :  { %1713 = vmatprep.subr.bf16.mxu1 %v1791_v59 }
  0x2e   :  { %1714 = vmatpush3.bf16.msra.mxu1 %v1791_v59 }
  0x2f   :  { %1676 = vmatmul.mubr.msk.bf16.gmra.mxu0 %vm284_vm0, %v1773_v45 }
  0x30   :  { %1679 = vmatprep.mubr.msk.bf16.mxu0 %vm284_vm0, %v1774_v46 }
  0x37   :  { %1680 = vmatmul.mubr.msk.bf16.gmra.mxu0 %vm284_vm0, %v1775_v48 }
  0x38   :  { %1683 = vmatprep.mubr.msk.bf16.mxu0 %vm284_vm0, %v1776_v49 }
  0x3f   :  { %1684 = vmatmul.mubr.msk.bf16.gmra.mxu0 %vm284_vm0, %v1777_v50 }
  0x40   :  { %1687 = vmatprep.mubr.msk.bf16.mxu0 %vm284_vm0, %v1778_v51 }
  0x47   :  { %1688 = vmatmul.mubr.msk.bf16.gmra.mxu0 %vm284_vm0, %v1779_v52 }
  0x48   :  { %1691 = vmatprep.mubr.msk.bf16.mxu0 %vm284_vm0, %v1780_v53 }
  0x4f   :  { %1692 = vmatmul.mubr.msk.bf16.gmra.mxu0 %vm284_vm0, %v1781_v54 }
  0x50   :  { %1695 = vmatprep.mubr.msk.bf16.mxu0 %vm284_vm0, %v1782_v55 }
  0x57   :  { %1696 = vmatmul.mubr.msk.bf16.gmra.mxu0 %vm284_vm0, %v1783_v56 }
  0xdf   :  { %v1669_v60 = vpop.f32.mrf.mxu0 }
  0xe0   :  { %v376_v34 = vadd.f32 %v1669_v60, %v2093_v62 }
  0xe1   :  { %v367_v61 = vpop.f32.mrf.mxu0 }
  0xe2   :  { %v368_v32 = vadd.f32 %v2093_v62, %v367_v61  ;;  %v496_v41 = vmax.f32 %v376_v34, 0.0 }
  0xe3   :  { %v1670_v63 = vpop.f32.mrf.mxu0 }
  0xe4   :  { %v379_v33 = vadd.f32 %v1670_v63, %v2093_v62  ;;  %v494_v39 = vmax.f32 %v368_v32, 0.0 }
  0xe5   :  { %v370_v35 = vpop.f32.mrf.mxu0 }
  0xe6   :  { %v371_v36 = vadd.f32 %v2093_v62, %v370_v35  ;;  %v497_v37 = vmax.f32 %v379_v33, 0.0 }
  0xe7   :  { %v1673_v38 = vpop.f32.mrf.mxu0 }
  0xe8   :  { %v495_v40 = vmax.f32 %v371_v36, 0.0  ;;  %v527_v44 = vpack.c.bf16 %v497_v37, %v496_v41  ;;  %v392_v48 = vadd.f32 %v1673_v38, %v2093_v62 }
  0xe9   :  { %v383_v42 = vpop.f32.mrf.mxu0 }
  0xea   :  { %v526_v43 = vpack.c.bf16 %v495_v40, %v494_v39  ;;  %v384_v46 = vadd.f32 %v2093_v62, %v383_v42  ;;  %v500_v55 = vmax.f32 %v392_v48, 0.0 }
  0xeb   :  { %v1674_v45 = vpop.f32.mrf.mxu0 }
  0xec   :  { %v395_v47 = vadd.f32 %v1674_v45, %v2093_v62  ;;  %1715 = vmatprep.mubr.bf16.mxu1 %v526_v43  ;;  %v498_v53 = vmax.f32 %v384_v46, 0.0 }
  0xed   :  { %v386_v49 = vpop.f32.mrf.mxu0  ;;  %1716 = vmatmul.mubr.bf16.vlgmr.msra.gmra.mxu1 %v527_v44 }
  0xee   :  { %v387_v50 = vadd.f32 %v2093_v62, %v386_v49  ;;  %v501_v51 = vmax.f32 %v395_v47, 0.0 }
  0xef   :  { %v1677_v52 = vpop.f32.mrf.mxu0 }
  0xf0   :  { %v499_v54 = vmax.f32 %v387_v50, 0.0  ;;  %v529_v58 = vpack.c.bf16 %v501_v51, %v500_v55  ;;  %v408_v63 = vadd.f32 %v1677_v52, %v2093_v62 }
  0xf1   :  { %v399_v56 = vpop.f32.mrf.mxu0 }
  0xf2   :  { %v528_v57 = vpack.c.bf16 %v499_v54, %v498_v53  ;;  %v400_v60 = vadd.f32 %v2093_v62, %v399_v56  ;;  %v504_v38 = vmax.f32 %v408_v63, 0.0 }
  0xf3   :  { %v1678_v59 = vpop.f32.mrf.mxu0 }
  0xf4   :  { %v411_v61 = vadd.f32 %v1678_v59, %v2093_v62  ;;  %1719 = vmatprep.mubr.bf16.mxu1 %v528_v57  ;;  %v502_v36 = vmax.f32 %v400_v60, 0.0 }
  0xf5   :  { %v402_v32 = vpop.f32.mrf.mxu0  ;;  %1720 = vmatmul.mubr.bf16.gmra.mxu1 %v529_v58 }
  0xf6   :  { %v403_v33 = vadd.f32 %v2093_v62, %v402_v32  ;;  %v505_v34 = vmax.f32 %v411_v61, 0.0 }
  0xf7   :  { %v1681_v35 = vpop.f32.mrf.mxu0 }
  0xf8   :  { %v503_v37 = vmax.f32 %v403_v33, 0.0  ;;  %v531_v41 = vpack.c.bf16 %v505_v34, %v504_v38  ;;  %v424_v45 = vadd.f32 %v1681_v35, %v2093_v62 }
  0xf9   :  { %v415_v39 = vpop.f32.mrf.mxu0 }
  0xfa   :  { %v530_v40 = vpack.c.bf16 %v503_v37, %v502_v36  ;;  %v416_v43 = vadd.f32 %v2093_v62, %v415_v39  ;;  %v508_v52 = vmax.f32 %v424_v45, 0.0 }
  0xfb   :  { %v1682_v42 = vpop.f32.mrf.mxu0 }
  0xfc   :  { %v427_v44 = vadd.f32 %v1682_v42, %v2093_v62  ;;  %1723 = vmatprep.mubr.bf16.mxu1 %v530_v40  ;;  %v506_v50 = vmax.f32 %v416_v43, 0.0 }
  0xfd   :  { %v418_v46 = vpop.f32.mrf.mxu0  ;;  %1724 = vmatmul.mubr.bf16.gmra.mxu1 %v531_v41 }
  0xfe   :  { %v419_v47 = vadd.f32 %v2093_v62, %v418_v46  ;;  %v509_v48 = vmax.f32 %v427_v44, 0.0 }
  0xff   :  { %v1685_v49 = vpop.f32.mrf.mxu0 }
 0x100   :  { %v507_v51 = vmax.f32 %v419_v47, 0.0  ;;  %v533_v55 = vpack.c.bf16 %v509_v48, %v508_v52  ;;  %v440_v59 = vadd.f32 %v1685_v49, %v2093_v62 }
 0x101   :  { %v431_v53 = vpop.f32.mrf.mxu0 }
 0x102   :  { %v532_v54 = vpack.c.bf16 %v507_v51, %v506_v50  ;;  %v432_v57 = vadd.f32 %v2093_v62, %v431_v53  ;;  %v512_v35 = vmax.f32 %v440_v59, 0.0 }
 0x103   :  { %v1686_v56 = vpop.f32.mrf.mxu0 }
 0x104   :  { %v443_v58 = vadd.f32 %v1686_v56, %v2093_v62  ;;  %1727 = vmatprep.mubr.bf16.mxu1 %v532_v54  ;;  %v510_v33 = vmax.f32 %v432_v57, 0.0 }
 0x105   :  { %v434_v60 = vpop.f32.mrf.mxu0  ;;  %1728 = vmatmul.mubr.bf16.gmra.mxu1 %v533_v55 }
 0x106   :  { %v435_v61 = vadd.f32 %v2093_v62, %v434_v60  ;;  %v513_v63 = vmax.f32 %v443_v58, 0.0 }
 0x107   :  { %v1689_v32 = vpop.f32.mrf.mxu0 }
 0x108   :  { %v511_v34 = vmax.f32 %v435_v61, 0.0  ;;  %v535_v38 = vpack.c.bf16 %v513_v63, %v512_v35  ;;  %v456_v42 = vadd.f32 %v1689_v32, %v2093_v62 }
 0x109   :  { %v447_v36 = vpop.f32.mrf.mxu0 }
 0x10a   :  { %v534_v37 = vpack.c.bf16 %v511_v34, %v510_v33  ;;  %v448_v40 = vadd.f32 %v2093_v62, %v447_v36  ;;  %v516_v49 = vmax.f32 %v456_v42, 0.0 }
 0x10b   :  { %v1690_v39 = vpop.f32.mrf.mxu0 }
 0x10c   :  { %v459_v41 = vadd.f32 %v1690_v39, %v2093_v62  ;;  %1731 = vmatprep.mubr.bf16.mxu1 %v534_v37  ;;  %v514_v47 = vmax.f32 %v448_v40, 0.0 }
 0x10d   :  { %v450_v43 = vpop.f32.mrf.mxu0  ;;  %1732 = vmatmul.mubr.bf16.gmra.mxu1 %v535_v38 }
 0x10e   :  { %v451_v44 = vadd.f32 %v2093_v62, %v450_v43  ;;  %v517_v45 = vmax.f32 %v459_v41, 0.0 }
 0x10f   :  { %v1693_v46 = vpop.f32.mrf.mxu0 }
 0x110   :  { %v515_v48 = vmax.f32 %v451_v44, 0.0  ;;  %v537_v52 = vpack.c.bf16 %v517_v45, %v516_v49  ;;  %v472_v56 = vadd.f32 %v1693_v46, %v2093_v62 }
 0x111   :  { %v463_v50 = vpop.f32.mrf.mxu0 }
 0x112   :  { %v536_v51 = vpack.c.bf16 %v515_v48, %v514_v47  ;;  %v464_v54 = vadd.f32 %v2093_v62, %v463_v50  ;;  %v520_v32 = vmax.f32 %v472_v56, 0.0  ;;  %v2130_v48 = vld [vmem:[%s2500_s4] ss:$0 sm:$0xff] }
 0x113   :  { %v1694_v53 = vpop.f32.mrf.mxu0 }
 0x114   :  { %v475_v55 = vadd.f32 %v1694_v53, %v2093_v62  ;;  %1735 = vmatprep.mubr.bf16.mxu1 %v536_v51  ;;  %v518_v61 = vmax.f32 %v464_v54, 0.0 }
 0x115   :  { %v466_v57 = vpop.f32.mrf.mxu0  ;;  %1736 = vmatmul.mubr.bf16.gmra.mxu1 %v537_v52 }
 0x116   :  { %v467_v58 = vadd.f32 %v2093_v62, %v466_v57  ;;  %v521_v59 = vmax.f32 %v475_v55, 0.0 }
 0x117   :  { %v1697_v60 = vpop.f32.mrf.mxu0 }
 0x118   :  { %v519_v63 = vmax.f32 %v467_v58, 0.0  ;;  %v539_v35 = vpack.c.bf16 %v521_v59, %v520_v32  ;;  %v488_v39 = vadd.f32 %v1697_v60, %v2093_v62 }
 0x119   :  { %v479_v33 = vpop.f32.mrf.mxu0 }
 0x11a   :  { %v538_v34 = vpack.c.bf16 %v519_v63, %v518_v61  ;;  %v480_v37 = vadd.f32 %v2093_v62, %v479_v33  ;;  %v524_v45 = vmax.f32 %v488_v39, 0.0 }
 0x11b   :  { %v1698_v36 = vpop.f32.mrf.mxu0 }
 0x11c   :  { %v491_v38 = vadd.f32 %v1698_v36, %v2093_v62  ;;  %1739 = vmatprep.mubr.bf16.mxu1 %v538_v34  ;;  %v522_v43 = vmax.f32 %v480_v37, 0.0 }
 0x11d   :  { %v482_v40 = vpop.f32.mrf.mxu0  ;;  %1740 = vmatmul.mubr.bf16.gmra.mxu1 %v539_v35 }
 0x11e   :  { %v483_v41 = vadd.f32 %v2093_v62, %v482_v40  ;;  %v525_v42 = vmax.f32 %v491_v38, 0.0 }
 0x120   :  { %v523_v44 = vmax.f32 %v483_v41, 0.0  ;;  %v541_v47 = vpack.c.bf16 %v525_v42, %v524_v45 }
 0x122   :  { %v540_v46 = vpack.c.bf16 %v523_v44, %v522_v43 }
 0x124   :  { %1743 = vmatprep.mubr.bf16.mxu1 %v540_v46 }
 0x125   :  { %1744 = vmatmul.mubr.bf16.gmra.mxu1 %v541_v47 }
 0x1ad   :  { %v1717_v49 = vpop.f32.mrf.mxu1 }
 0x1ae   :  { %v2133_v50 = vadd.f32 %v1717_v49, %v2130_v48 }
 0x1af   :  { %v647_v51 = vpop.f32.mrf.mxu1 }
 0x1b0   :  { %776 = vst.msk [vmem:[#allocation3 + $0x10] sm:$0xff] %vm284_vm0, %v2133_v50  ;;  %v2138_v62 = vadd.f32 %v2130_v48, %v647_v51 }
 0x1b1   :  { %v1718_v52 = vpop.f32.mrf.mxu1 }
 0x1b2   :  { %774 = vst.msk [vmem:[#allocation3] sm:$0xff] %vm284_vm0, %v2138_v62  ;;  %v2143_v53 = vadd.f32 %v1718_v52, %v2130_v48 }
 0x1b3   :  { %v650_v54 = vpop.f32.mrf.mxu1 }
 0x1b4   :  { %777 = vst.msk [vmem:[#allocation3 + $0x18] sm:$0xff] %vm284_vm0, %v2143_v53  ;;  %v2148_v55 = vadd.f32 %v2130_v48, %v650_v54 }
 0x1b5   :  { %v1721_v56 = vpop.f32.mrf.mxu1 }
 0x1b6   :  { %775 = vst.msk [vmem:[#allocation3 + $0x8] sm:$0xff] %vm284_vm0, %v2148_v55  ;;  %v2153_v57 = vadd.f32 %v1721_v56, %v2130_v48 }
 0x1b7   :  { %v663_v58 = vpop.f32.mrf.mxu1 }
 0x1b8   :  { %780 = vst.msk [vmem:[#allocation3 + $0x30] sm:$0xff] %vm284_vm0, %v2153_v57  ;;  %v2158_v59 = vadd.f32 %v2130_v48, %v663_v58 }
 0x1b9   :  { %v1722_v60 = vpop.f32.mrf.mxu1 }
 0x1ba   :  { %778 = vst.msk [vmem:[#allocation3 + $0x20] sm:$0xff] %vm284_vm0, %v2158_v59  ;;  %v2163_v61 = vadd.f32 %v1722_v60, %v2130_v48 }
 0x1bb   :  { %v666_v63 = vpop.f32.mrf.mxu1 }
 0x1bc   :  { %781 = vst.msk [vmem:[#allocation3 + $0x38] sm:$0xff] %vm284_vm0, %v2163_v61  ;;  %v2168_v32 = vadd.f32 %v2130_v48, %v666_v63 }
 0x1bd   :  { %v1725_v33 = vpop.f32.mrf.mxu1 }
 0x1be   :  { %779 = vst.msk [vmem:[#allocation3 + $0x28] sm:$0xff] %vm284_vm0, %v2168_v32  ;;  %v2173_v34 = vadd.f32 %v1725_v33, %v2130_v48 }
 0x1bf   :  { %v679_v35 = vpop.f32.mrf.mxu1 }
 0x1c0   :  { %784 = vst.msk [vmem:[#allocation3 + $0x50] sm:$0xff] %vm284_vm0, %v2173_v34  ;;  %v2178_v36 = vadd.f32 %v2130_v48, %v679_v35 }
 0x1c1   :  { %v1726_v37 = vpop.f32.mrf.mxu1 }
 0x1c2   :  { %782 = vst.msk [vmem:[#allocation3 + $0x40] sm:$0xff] %vm284_vm0, %v2178_v36  ;;  %v2183_v38 = vadd.f32 %v1726_v37, %v2130_v48 }
 0x1c3   :  { %v682_v39 = vpop.f32.mrf.mxu1 }
 0x1c4   :  { %785 = vst.msk [vmem:[#allocation3 + $0x58] sm:$0xff] %vm284_vm0, %v2183_v38  ;;  %v2188_v40 = vadd.f32 %v2130_v48, %v682_v39 }
 0x1c5   :  { %v1729_v41 = vpop.f32.mrf.mxu1 }
 0x1c6   :  { %783 = vst.msk [vmem:[#allocation3 + $0x48] sm:$0xff] %vm284_vm0, %v2188_v40  ;;  %v704_v42 = vadd.f32 %v1729_v41, %v2130_v48 }
 0x1c7   :  { %v695_v43 = vpop.f32.mrf.mxu1 }
 0x1c8   :  { %788 = vst.msk [vmem:[#allocation3 + $0x70] sm:$0xff] %vm284_vm0, %v704_v42  ;;  %v2195_v44 = vadd.f32 %v2130_v48, %v695_v43 }
 0x1c9   :  { %v1730_v45 = vpop.f32.mrf.mxu1 }
 0x1ca   :  { %786 = vst.msk [vmem:[#allocation3 + $0x60] sm:$0xff] %vm284_vm0, %v2195_v44  ;;  %v707_v46 = vadd.f32 %v1730_v45, %v2130_v48 }
 0x1cb   :  { %v698_v47 = vpop.f32.mrf.mxu1 }
 0x1cc   :  { %789 = vst.msk [vmem:[#allocation3 + $0x78] sm:$0xff] %vm284_vm0, %v707_v46  ;;  %v699_v49 = vadd.f32 %v2130_v48, %v698_v47  ;;  %v849_v12 = vpack.c.bf16 %v707_v46, %v704_v42 }
 0x1cd   :  { %v1733_v51 = vpop.f32.mrf.mxu1 }
 0x1ce   :  { %787 = vst.msk [vmem:[#allocation3 + $0x68] sm:$0xff] %vm284_vm0, %v699_v49  ;;  %v2204_v52 = vadd.f32 %v1733_v51, %v2130_v48 }
 0x1cf   :  { %v711_v54 = vpop.f32.mrf.mxu1 }
 0x1d0   :  { %792 = vst.msk [vmem:[#allocation3 + $0x90] sm:$0xff] %vm284_vm0, %v2204_v52  ;;  %v2209_v56 = vadd.f32 %v2130_v48, %v711_v54 }
 0x1d1   :  { %v1734_v58 = vpop.f32.mrf.mxu1 }
 0x1d2   :  { %790 = vst.msk [vmem:[#allocation3 + $0x80] sm:$0xff] %vm284_vm0, %v2209_v56  ;;  %v2214_v60 = vadd.f32 %v1734_v58, %v2130_v48 }
 0x1d3   :  { %v714_v63 = vpop.f32.mrf.mxu1 }
 0x1d4   :  { %793 = vst.msk [vmem:[#allocation3 + $0x98] sm:$0xff] %vm284_vm0, %v2214_v60  ;;  %v2219_v33 = vadd.f32 %v2130_v48, %v714_v63 }
 0x1d5   :  { %v1737_v35 = vpop.f32.mrf.mxu1 }
 0x1d6   :  { %791 = vst.msk [vmem:[#allocation3 + $0x88] sm:$0xff] %vm284_vm0, %v2219_v33  ;;  %v2224_v37 = vadd.f32 %v1737_v35, %v2130_v48 }
 0x1d7   :  { %v727_v39 = vpop.f32.mrf.mxu1 }
 0x1d8   :  { %796 = vst.msk [vmem:[#allocation3 + $0xb0] sm:$0xff] %vm284_vm0, %v2224_v37  ;;  %v2229_v41 = vadd.f32 %v2130_v48, %v727_v39 }
 0x1d9   :  { %v1738_v43 = vpop.f32.mrf.mxu1 }
 0x1da   :  { %794 = vst.msk [vmem:[#allocation3 + $0xa0] sm:$0xff] %vm284_vm0, %v2229_v41  ;;  %v739_v45 = vadd.f32 %v1738_v43, %v2130_v48 }
 0x1db   :  { %v730_v47 = vpop.f32.mrf.mxu1 }
 0x1dc   :  { %797 = vst.msk [vmem:[#allocation3 + $0xb8] sm:$0xff] %vm284_vm0, %v739_v45  ;;  %v731_v51 = vadd.f32 %v2130_v48, %v730_v47 }
 0x1dd   :  { %v1741_v54 = vpop.f32.mrf.mxu1 }
 0x1de   :  { %795 = vst.msk [vmem:[#allocation3 + $0xa8] sm:$0xff] %vm284_vm0, %v731_v51  ;;  %v752_v58 = vadd.f32 %v1741_v54, %v2130_v48 }
 0x1df   :  { %v743_v63 = vpop.f32.mrf.mxu1 }
 0x1e0   :  { %800 = vst.msk [vmem:[#allocation3 + $0xd0] sm:$0xff] %vm284_vm0, %v752_v58  ;;  %v744_v35 = vadd.f32 %v2130_v48, %v743_v63 }
 0x1e1   :  { %v1742_v39 = vpop.f32.mrf.mxu1 }
 0x1e2   :  { %798 = vst.msk [vmem:[#allocation3 + $0xc0] sm:$0xff] %vm284_vm0, %v744_v35  ;;  %v755_v43 = vadd.f32 %v1742_v39, %v2130_v48 }
 0x1e3   :  { %v746_v16 = vpop.f32.mrf.mxu1 }
 0x1e4   :  { %801 = vst.msk [vmem:[#allocation3 + $0xd8] sm:$0xff] %vm284_vm0, %v755_v43  ;;  %v747_v47 = vadd.f32 %v2130_v48, %v746_v16 }
 0x1e5   :  { %v1745_v17 = vpop.f32.mrf.mxu1 }
 0x1e6   :  { %799 = vst.msk [vmem:[#allocation3 + $0xc8] sm:$0xff] %vm284_vm0, %v747_v47  ;;  %v768_v54 = vadd.f32 %v1745_v17, %v2130_v48 }
 0x1e7   :  { %v759_v14 = vpop.f32.mrf.mxu1 }
 0x1e8   :  { %804 = vst.msk [vmem:[#allocation3 + $0xf0] sm:$0xff] %vm284_vm0, %v768_v54  ;;  %v760_v63 = vadd.f32 %v2130_v48, %v759_v14 }
 0x1e9   :  { %v1746_v15 = vpop.f32.mrf.mxu1 }
 0x1ea   :  { %802 = vst.msk [vmem:[#allocation3 + $0xe0] sm:$0xff] %vm284_vm0, %v760_v63  ;;  %v771_v39 = vadd.f32 %v1746_v15, %v2130_v48 }
 0x1eb   :  { %v762_v30 = vpop.f32.mrf.mxu1 }
 0x1ec   :  { %805 = vst.msk [vmem:[#allocation3 + $0xf8] sm:$0xff] %vm284_vm0, %v771_v39  ;;  %v763_v16 = vadd.f32 %v2130_v48, %v762_v30  ;;  %v857_v31 = vpack.c.bf16 %v771_v39, %v768_v54 }
 0x1ee   :  { %803 = vst.msk [vmem:[#allocation3 + $0xe8] sm:$0xff] %vm284_vm0, %v763_v16  ;;  %v856_v17 = vpack.c.bf16 %v763_v16, %v760_v63 }
 0x1ef   :  { %1792 = dma.done.wait [#allocation4], 4096 }
 0x1f0   :  { %1793 = vsyncadd [#allocation4], 4294963200  ;;  %1547 = vmatprep.subr.bf16.mxu0 %v857_v31  ;;  %1747 = vmatprep.subr.bf16.mxu1 %v857_v31  ;;  %v848_v14 = vpack.c.bf16 %v699_v49, %v2195_v44  ;;  %v855_v15 = vpack.c.bf16 %v755_v43, %v752_v58  ;;  %v1471_v13 = vcombine.high %v1833_v0, %v1838_v1  ;;  %s1794_s4 = smov 64  }
 0x1f1   :  { %1548 = vmatpush3.bf16.msra.mxu0 %v849_v12  ;;  %1755 = vmatpush3.bf16.msra.mxu1 %v849_v12  ;;  %v1489_v30 = vcombine.high %v1923_v18, %v1928_v19  ;;  %v847_v48 = vpack.c.bf16 %v2183_v38, %v2173_v34  ;;  %v854_v12 = vpack.c.bf16 %v747_v47, %v744_v35 }
 0x1f2   :  { %1549 = vmatprep.subr.bf16.mxu0 %v856_v17  ;;  %1748 = vmatprep.subr.bf16.mxu1 %v856_v17  ;;  %v846_v31 = vpack.c.bf16 %v2188_v40, %v2178_v36  ;;  %v853_v42 = vpack.c.bf16 %v739_v45, %v2224_v37  ;;  %v852_v34 = vpack.c.bf16 %v731_v51, %v2229_v41 }
 0x1f3   :  { %1050 = vmatprep.mubr.bf16.mxu0 %v1471_v13  ;;  %1122 = vmatprep.mubr.bf16.mxu1 %v1489_v30  ;;  %v845_v13 = vpack.c.bf16 %v2163_v61, %v2153_v57  ;;  %v844_v38 = vpack.c.bf16 %v2168_v32, %v2158_v59  ;;  %v851_v36 = vpack.c.bf16 %v2214_v60, %v2204_v52  ;;  %v2526_v60 = vld [vmem:[#allocation11_spill] sm:$0xff] }
 0x1f4   :  { %v843_v40 = vpack.c.bf16 %v2143_v53, %v2133_v50  ;;  %v850_v57 = vpack.c.bf16 %v2219_v33, %v2209_v56  ;;  %v842_v59 = vpack.c.bf16 %v2148_v55, %v2138_v62  ;;  %v1470_v61 = vcombine.low %v1833_v0, %v1838_v1 }
 0x1f5   :  { %1550 = vmatpush3.bf16.msra.mxu0 %v848_v14  ;;  %1756 = vmatpush3.bf16.msra.mxu1 %v848_v14  ;;  %v1488_v32 = vcombine.low %v1923_v18, %v1928_v19  ;;  %v1473_v50 = vcombine.high %v1843_v2, %v1848_v3  ;;  %v1491_v53 = vcombine.high %v1933_v20, %v1938_v21 }
 0x1f6   :  { %1551 = vmatprep.subr.bf16.mxu0 %v855_v15  ;;  %1749 = vmatprep.subr.bf16.mxu1 %v855_v15  ;;  %v1472_v62 = vcombine.low %v1843_v2, %v1848_v3  ;;  %v1490_v0 = vcombine.low %v1933_v20, %v1938_v21  ;;  %v1475_v1 = vcombine.high %v1853_v4, %v1858_v5 }
 0x1f7   :  { %v1493_v18 = vcombine.high %v1943_v22, %v1948_v23  ;;  %v1474_v19 = vcombine.low %v1853_v4, %v1858_v5  ;;  %v1492_v55 = vcombine.low %v1943_v22, %v1948_v23  ;;  %v1477_v2 = vcombine.high %v1863_v6, %v1868_v7 }
 0x1f8   :  { %v1495_v3 = vcombine.high %v1953_v24, %v1958_v25  ;;  %v1476_v20 = vcombine.low %v1863_v6, %v1868_v7  ;;  %v1494_v21 = vcombine.low %v1953_v24, %v1958_v25  ;;  %v1479_v4 = vcombine.high %v1873_v8, %v1878_v9 }
 0x1f9   :  { %1552 = vmatpush3.bf16.msra.mxu0 %v847_v48  ;;  %1757 = vmatpush3.bf16.msra.mxu1 %v847_v48  ;;  %v1497_v5 = vcombine.high %v1963_v26, %v1968_v27  ;;  %v1478_v22 = vcombine.low %v1873_v8, %v1878_v9  ;;  %v1496_v23 = vcombine.low %v1963_v26, %v1968_v27  ;;  %v2519_v8 = vld [vmem:[#allocation8_spill] sm:$0xff]  ;;  %v2520_v9 = vld [vmem:[#allocation7_spill] sm:$0xff]  ;;  %v2521_v26 = vld [vmem:[#allocation14_spill] sm:$0xff] }
 0x1fa   :  { %1553 = vmatprep.subr.bf16.mxu0 %v854_v12  ;;  %1750 = vmatprep.subr.bf16.mxu1 %v854_v12  ;;  %v1481_v6 = vcombine.high %v1883_v10, %v1888_v11  ;;  %v1499_v7 = vcombine.high %v1973_v28, %v1978_v29  ;;  %v1480_v24 = vcombine.low %v1883_v10, %v1888_v11  ;;  %v2522_v27 = vld [vmem:[#allocation13_spill] sm:$0xff]  ;;  %v2523_v10 = vld [vmem:[#allocation10_spill] sm:$0xff] }
 0x1fb   :  { %v1498_v25 = vcombine.low %v1973_v28, %v1978_v29  ;;  %v1483_v44 = vcombine.high %v2520_v9, %v2519_v8  ;;  %v1501_v46 = vcombine.high %v2522_v27, %v2521_v26  ;;  %v1482_v49 = vcombine.low %v2520_v9, %v2519_v8  ;;  %v2524_v11 = vld [vmem:[#allocation9_spill] sm:$0xff]  ;;  %v2525_v29 = vld [vmem:[#allocation12_spill] sm:$0xff] }
 0x1fc   :  { %v1500_v52 = vcombine.low %v2522_v27, %v2521_v26  ;;  %v1485_v56 = vcombine.high %v2524_v11, %v2523_v10  ;;  %v1484_v28 = vcombine.low %v2524_v11, %v2523_v10  ;;  %v1487_v33 = vcombine.high %v2526_v60, %v2525_v29 }
 0x1fd   :  { %1554 = vmatpush3.bf16.msra.mxu0 %v846_v31  ;;  %1758 = vmatpush3.bf16.msra.mxu1 %v846_v31  ;;  %v1486_v37 = vcombine.low %v2526_v60, %v2525_v29 }
 0x1fe   :  { %1555 = vmatprep.subr.bf16.mxu0 %v853_v42  ;;  %1751 = vmatprep.subr.bf16.mxu1 %v853_v42 }
 0x201   :  { %1556 = vmatpush3.bf16.msra.mxu0 %v845_v13  ;;  %1759 = vmatpush3.bf16.msra.mxu1 %v845_v13 }
 0x202   :  { %1557 = vmatprep.subr.bf16.mxu0 %v852_v34  ;;  %1752 = vmatprep.subr.bf16.mxu1 %v852_v34 }
 0x205   :  { %1558 = vmatpush3.bf16.msra.mxu0 %v844_v38  ;;  %1760 = vmatpush3.bf16.msra.mxu1 %v844_v38 }
 0x206   :  { %1559 = vmatprep.subr.bf16.mxu0 %v851_v36  ;;  %1753 = vmatprep.subr.bf16.mxu1 %v851_v36 }
 0x209   :  { %1560 = vmatpush3.bf16.msra.mxu0 %v843_v40  ;;  %1761 = vmatpush3.bf16.msra.mxu1 %v843_v40 }
 0x20a   :  { %1561 = vmatprep.subr.bf16.mxu0 %v850_v57  ;;  %1754 = vmatprep.subr.bf16.mxu1 %v850_v57 }
 0x20d   :  { %1562 = vmatpush3.bf16.msra.mxu0 %v842_v59  ;;  %1762 = vmatpush3.bf16.msra.mxu1 %v842_v59 }
 0x210   :  { %1051 = vmatmul.mubr.bf16.vlgmr.msra.gmra.mxu0 %v1470_v61  ;;  %1123 = vmatmul.mubr.bf16.vlgmr.msra.gmra.mxu1 %v1488_v32 }
 0x211   :  { %1058 = vmatprep.mubr.bf16.mxu0 %v1473_v50  ;;  %1130 = vmatprep.mubr.bf16.mxu1 %v1491_v53 }
 0x218   :  { %1059 = vmatmul.mubr.bf16.gmra.mxu0 %v1472_v62  ;;  %1131 = vmatmul.mubr.bf16.gmra.mxu1 %v1490_v0 }
 0x219   :  { %1066 = vmatprep.mubr.bf16.mxu0 %v1475_v1  ;;  %1138 = vmatprep.mubr.bf16.mxu1 %v1493_v18 }
 0x220   :  { %1067 = vmatmul.mubr.bf16.gmra.mxu0 %v1474_v19  ;;  %1139 = vmatmul.mubr.bf16.gmra.mxu1 %v1492_v55 }
 0x221   :  { %1074 = vmatprep.mubr.bf16.mxu0 %v1477_v2  ;;  %1146 = vmatprep.mubr.bf16.mxu1 %v1495_v3 }
 0x228   :  { %1075 = vmatmul.mubr.bf16.gmra.mxu0 %v1476_v20  ;;  %1147 = vmatmul.mubr.bf16.gmra.mxu1 %v1494_v21 }
 0x229   :  { %1082 = vmatprep.mubr.bf16.mxu0 %v1479_v4  ;;  %1154 = vmatprep.mubr.bf16.mxu1 %v1497_v5 }
 0x230   :  { %1083 = vmatmul.mubr.bf16.gmra.mxu0 %v1478_v22  ;;  %1155 = vmatmul.mubr.bf16.gmra.mxu1 %v1496_v23 }
 0x231   :  { %1090 = vmatprep.mubr.bf16.mxu0 %v1481_v6  ;;  %1162 = vmatprep.mubr.bf16.mxu1 %v1499_v7 }
 0x238   :  { %1091 = vmatmul.mubr.bf16.gmra.mxu0 %v1480_v24  ;;  %1163 = vmatmul.mubr.bf16.gmra.mxu1 %v1498_v25 }
 0x239   :  { %1098 = vmatprep.mubr.bf16.mxu0 %v1483_v44  ;;  %1170 = vmatprep.mubr.bf16.mxu1 %v1501_v46 }
 0x240   :  { %1099 = vmatmul.mubr.bf16.gmra.mxu0 %v1482_v49  ;;  %1171 = vmatmul.mubr.bf16.gmra.mxu1 %v1500_v52 }
 0x241   :  { %1106 = vmatprep.mubr.bf16.mxu0 %v1485_v56 }
 0x248   :  { %1107 = vmatmul.mubr.bf16.gmra.mxu0 %v1484_v28 }
 0x249   :  { %1114 = vmatprep.mubr.bf16.mxu0 %v1487_v33 }
 0x250   :  { %1115 = vmatmul.mubr.bf16.gmra.mxu0 %v1486_v37 }
 0x2d0   :  { %v1563_v41 = vpop.f32.mrf.mxu0  ;;  %v1617_v45 = vpop.f32.mrf.mxu1 }
 0x2d2   :  { %v1564_v51 = vpop.f32.mrf.mxu0  ;;  %v1618_v58 = vpop.f32.mrf.mxu1 }
 0x2d3   :  { %v1565_v35 = vadd.f32 %v1564_v51, %v1563_v41  ;;  %v1619_v54 = vadd.f32 %v1618_v58, %v1617_v45 }
 0x2d4   :  { %v1566_v43 = vpop.f32.mrf.mxu0  ;;  %v1620_v47 = vpop.f32.mrf.mxu1 }
 0x2d5   :  { %1244 = vrot.lane.b32.xlu0 %v1565_v35, %s1794_s4 }
 0x2d6   :  { %v1567_v63 = vpop.f32.mrf.mxu0  ;;  %v1621_v39 = vpop.f32.mrf.mxu1 }
 0x2d7   :  { %v1622_v16 = vadd.f32 %v1621_v39, %v1620_v47  ;;  %v1568_v48 = vadd.f32 %v1567_v63, %v1566_v43 }
 0x2d8   :  { %v1569_v17 = vpop.f32.mrf.mxu0  ;;  %v1623_v14 = vpop.f32.mrf.mxu1 }
 0x2d9   :  { %1282 = vrot.lane.b32.xlu1 %v1622_v16, %s1794_s4  ;;  %1280 = vrot.lane.b32.xlu0 %v1619_v54, %s1794_s4 }
 0x2da   :  { %v1570_v15 = vpop.f32.mrf.mxu0  ;;  %v1624_v30 = vpop.f32.mrf.mxu1 }
 0x2db   :  { %v1571_v12 = vadd.f32 %v1570_v15, %v1569_v17  ;;  %v1625_v13 = vadd.f32 %v1624_v30, %v1623_v14 }
 0x2dc   :  { %v1572_v31 = vpop.f32.mrf.mxu0  ;;  %v1626_v42 = vpop.f32.mrf.mxu1 }
 0x2dd   :  { %1248 = vrot.lane.b32.xlu1 %v1571_v12, %s1794_s4  ;;  %1246 = vrot.lane.b32.xlu0 %v1568_v48, %s1794_s4 }
 0x2de   :  { %v1573_v34 = vpop.f32.mrf.mxu0  ;;  %v1627_v38 = vpop.f32.mrf.mxu1 }
 0x2df   :  { %v1574_v36 = vadd.f32 %v1573_v34, %v1572_v31  ;;  %v1628_v59 = vadd.f32 %v1627_v38, %v1626_v42 }
 0x2e0   :  { %v1575_v40 = vpop.f32.mrf.mxu0  ;;  %v1629_v57 = vpop.f32.mrf.mxu1 }
 0x2e1   :  { %1250 = vrot.lane.b32.xlu1 %v1574_v36, %s1794_s4  ;;  %1284 = vrot.lane.b32.xlu0 %v1625_v13, %s1794_s4 }
 0x2e2   :  { %v1576_v61 = vpop.f32.mrf.mxu0  ;;  %v1630_v32 = vpop.f32.mrf.mxu1 }
 0x2e3   :  { %v1577_v50 = vadd.f32 %v1576_v61, %v1575_v40  ;;  %v1631_v0 = vadd.f32 %v1630_v32, %v1629_v57 }
 0x2e4   :  { %v1578_v53 = vpop.f32.mrf.mxu0  ;;  %v1632_v62 = vpop.f32.mrf.mxu1 }
 0x2e5   :  { %1286 = vrot.lane.b32.xlu1 %v1628_v59, %s1794_s4  ;;  %1252 = vrot.lane.b32.xlu0 %v1577_v50, %s1794_s4 }
 0x2e6   :  { %v1579_v1 = vpop.f32.mrf.mxu0  ;;  %v1633_v18 = vpop.f32.mrf.mxu1 }
 0x2e7   :  { %v1580_v19 = vadd.f32 %v1579_v1, %v1578_v53  ;;  %v1634_v3 = vadd.f32 %v1633_v18, %v1632_v62  ;;  %v1180_v1 = vld [vmem:[#allocation3] sm:$0xff] }
 0x2e8   :  { %v1581_v55 = vpop.f32.mrf.mxu0  ;;  %v1635_v2 = vpop.f32.mrf.mxu1 }
 0x2e9   :  { %1254 = vrot.lane.b32.xlu1 %v1580_v19, %s1794_s4  ;;  %1288 = vrot.lane.b32.xlu0 %v1631_v0, %s1794_s4 }
 0x2ea   :  { %v1582_v20 = vpop.f32.mrf.mxu0  ;;  %v1636_v21 = vpop.f32.mrf.mxu1 }
 0x2eb   :  { %v1583_v4 = vadd.f32 %v1582_v20, %v1581_v55  ;;  %v1637_v23 = vadd.f32 %v1636_v21, %v1635_v2  ;;  %v1199_v55 = vld [vmem:[#allocation3 + $0x98] sm:$0xff]  ;;  %v1198_v2 = vld [vmem:[#allocation3 + $0x90] sm:$0xff] }
 0x2ec   :  { %v1584_v5 = vpop.f32.mrf.mxu0  ;;  %v1638_v22 = vpop.f32.mrf.mxu1 }
 0x2ed   :  { %1290 = vrot.lane.b32.xlu1 %v1634_v3, %s1794_s4  ;;  %1256 = vrot.lane.b32.xlu0 %v1583_v4, %s1794_s4 }
 0x2ee   :  { %v1585_v6 = vpop.f32.mrf.mxu0  ;;  %v1639_v7 = vpop.f32.mrf.mxu1 }
 0x2ef   :  { %v1586_v24 = vadd.f32 %v1585_v6, %v1584_v5  ;;  %v1640_v9 = vadd.f32 %v1639_v7, %v1638_v22  ;;  %v1182_v5 = vld [vmem:[#allocation3 + $0x10] sm:$0xff]  ;;  %v1181_v22 = vld [vmem:[#allocation3 + $0x8] sm:$0xff] }
 0x2f0   :  { %v1587_v25 = vpop.f32.mrf.mxu0  ;;  %v1641_v8 = vpop.f32.mrf.mxu1 }
 0x2f1   :  { %1258 = vrot.lane.b32.xlu1 %v1586_v24, %s1794_s4  ;;  %1292 = vrot.lane.b32.xlu0 %v1637_v23, %s1794_s4 }
 0x2f2   :  { %v1588_v44 = vpop.f32.mrf.mxu0  ;;  %v1642_v26 = vpop.f32.mrf.mxu1 }
 0x2f3   :  { %v1589_v27 = vadd.f32 %v1588_v44, %v1587_v25  ;;  %v1643_v52 = vadd.f32 %v1642_v26, %v1641_v8  ;;  %v1183_v25 = vld [vmem:[#allocation3 + $0x18] sm:$0xff]  ;;  %v1200_v8 = vld [vmem:[#allocation3 + $0xa0] sm:$0xff] }
 0x2f4   :  { %v1590_v46 = vpop.f32.mrf.mxu0  ;;  %v1644_v49 = vpop.f32.mrf.mxu1 }
 0x2f5   :  { %1294 = vrot.lane.b32.xlu1 %v1640_v9, %s1794_s4  ;;  %1260 = vrot.lane.b32.xlu0 %v1589_v27, %s1794_s4 }
 0x2f6   :  { %v1591_v10 = vpop.f32.mrf.mxu0  ;;  %v1645_v11 = vpop.f32.mrf.mxu1 }
 0x2f7   :  { %v1592_v56 = vadd.f32 %v1591_v10, %v1590_v46  ;;  %v1646_v60 = vadd.f32 %v1645_v11, %v1644_v49  ;;  %v1201_v46 = vld [vmem:[#allocation3 + $0xa8] sm:$0xff]  ;;  %v1184_v49 = vld [vmem:[#allocation3 + $0x20] sm:$0xff] }
 0x2f8   :  { %v1593_v28 = vpop.f32.mrf.mxu0  ;;  %v1647_v29 = vpop.f32.mrf.mxu1 }
 0x2f9   :  { %1262 = vrot.lane.b32.xlu1 %v1592_v56, %s1794_s4  ;;  %1296 = vrot.lane.b32.xlu0 %v1643_v52, %s1794_s4 }
 0x2fa   :  { %v1594_v33 = vpop.f32.mrf.mxu0  ;;  %v1648_v37 = vpop.f32.mrf.mxu1 }
 0x2fb   :  { %v1595_v41 = vadd.f32 %v1594_v33, %v1593_v28  ;;  %v1649_v58 = vadd.f32 %v1648_v37, %v1647_v29  ;;  %v1185_v28 = vld [vmem:[#allocation3 + $0x28] sm:$0xff]  ;;  %v1202_v29 = vld [vmem:[#allocation3 + $0xb0] sm:$0xff] }
 0x2fc   :  { %v1596_v45 = vpop.f32.mrf.mxu0  ;;  %v1650_v51 = vpop.f32.mrf.mxu1 }
 0x2fd   :  { %1298 = vrot.lane.b32.xlu1 %v1646_v60, %s1794_s4  ;;  %1264 = vrot.lane.b32.xlu0 %v1595_v41, %s1794_s4 }
 0x2fe   :  { %v1597_v35 = vpop.f32.mrf.mxu0  ;;  %v1651_v43 = vpop.f32.mrf.mxu1 }
 0x2ff   :  { %v1598_v47 = vadd.f32 %v1597_v35, %v1596_v45  ;;  %v1652_v63 = vadd.f32 %v1651_v43, %v1650_v51  ;;  %v1203_v45 = vld [vmem:[#allocation3 + $0xb8] sm:$0xff]  ;;  %v1186_v51 = vld [vmem:[#allocation3 + $0x30] sm:$0xff] }
 0x300   :  { %v1599_v54 = vpop.f32.mrf.mxu0  ;;  %v1653_v42 = vpop.f32.mrf.mxu1 }
 0x301   :  { %1266 = vrot.lane.b32.xlu1 %v1598_v47, %s1794_s4  ;;  %1300 = vrot.lane.b32.xlu0 %v1649_v58, %s1794_s4 }
 0x302   :  { %v1600_v39 = vpop.f32.mrf.mxu0  ;;  %v1654_v36 = vpop.f32.mrf.mxu1 }
 0x303   :  { %v1601_v16 = vadd.f32 %v1600_v39, %v1599_v54  ;;  %v1655_v50 = vadd.f32 %v1654_v36, %v1653_v42  ;;  %v1187_v54 = vld [vmem:[#allocation3 + $0x38] sm:$0xff] }
 0x304   :  { %v1602_v17 = vpop.f32.mrf.mxu0  ;;  %v1656_v59 = vpop.f32.mrf.mxu1 }
 0x305   :  { %1302 = vrot.lane.b32.xlu1 %v1652_v63, %s1794_s4  ;;  %1268 = vrot.lane.b32.xlu0 %v1601_v16, %s1794_s4  ;;  %v1204_v63 = vld [vmem:[#allocation3 + $0xc0] sm:$0xff] }
 0x306   :  { %v1603_v14 = vpop.f32.mrf.mxu0  ;;  %v1657_v62 = vpop.f32.mrf.mxu1 }
 0x307   :  { %v1604_v15 = vadd.f32 %v1603_v14, %v1602_v17  ;;  %v1658_v0 = vadd.f32 %v1657_v62, %v1656_v59  ;;  %v1207_v59 = vld [vmem:[#allocation3 + $0xd8] sm:$0xff] }
 0x308   :  { %v1605_v30 = vpop.f32.mrf.mxu0 }
 0x309   :  { %1270 = vrot.lane.b32.xlu1 %v1604_v15, %s1794_s4  ;;  %v1205_v15 = vld [vmem:[#allocation3 + $0xc8] sm:$0xff] }
 0x30a   :  { %v1606_v48 = vpop.f32.mrf.mxu0 }
 0x30b   :  { %v1607_v12 = vadd.f32 %v1606_v48, %v1605_v30  ;;  %v1188_v30 = vld [vmem:[#allocation3 + $0x40] sm:$0xff] }
 0x30c   :  { %v1608_v31 = vpop.f32.mrf.mxu0 }
 0x30d   :  { %1272 = vrot.lane.b32.xlu0 %v1607_v12, %s1794_s4 }
 0x30e   :  { %v1609_v13 = vpop.f32.mrf.mxu0 }
 0x30f   :  { %v1610_v34 = vadd.f32 %v1609_v13, %v1608_v31  ;;  %v1189_v13 = vld [vmem:[#allocation3 + $0x48] sm:$0xff] }
 0x310   :  { %v1611_v38 = vpop.f32.mrf.mxu0 }
 0x311   :  { %1274 = vrot.lane.b32.xlu1 %v1610_v34, %s1794_s4  ;;  %v1206_v34 = vld [vmem:[#allocation3 + $0xd0] sm:$0xff] }
 0x312   :  { %v1612_v40 = vpop.f32.mrf.mxu0 }
 0x313   :  { %v1613_v57 = vadd.f32 %v1612_v40, %v1611_v38 }
 0x314   :  { %v1614_v61 = vpop.f32.mrf.mxu0 }
 0x315   :  { %1276 = vrot.lane.b32.xlu0 %v1613_v57, %s1794_s4 }
 0x316   :  { %v1615_v32 = vpop.f32.mrf.mxu0 }
 0x317   :  { %v1616_v53 = vadd.f32 %v1615_v32, %v1614_v61  ;;  %v1190_v61 = vld [vmem:[#allocation3 + $0x50] sm:$0xff] }
 0x319   :  { %1278 = vrot.lane.b32.xlu1 %v1616_v53, %s1794_s4  ;;  %1304 = vrot.lane.b32.xlu0 %v1655_v50, %s1794_s4 }
 0x31d   :  { %1306 = vrot.lane.b32.xlu1 %v1658_v0, %s1794_s4  ;;  %v1191_v0 = vld [vmem:[#allocation3 + $0x58] sm:$0xff] }
 0x347   :  { %v1245_v18 = vpop.permute.xlu0 %1244 }
 0x348   :  { %v1340_v19 = vsel %vm284_vm0, %v1180_v1, %v1245_v18  ;;  %v1208_v1 = vld [vmem:[#allocation3 + $0xe0] sm:$0xff] }
 0x349   :  { %1372 = vst [vmem:[%s2502_s6] sm:$0xff] %v1340_v19 }
 0x34b   :  { %v1283_v3 = vpop.permute.xlu1 %1282  ;;  %v1281_v20 = vpop.permute.xlu0 %1280 }
 0x34c   :  { %v1359_v21 = vsel %vm284_vm0, %v1199_v55, %v1283_v3  ;;  %v1358_v4 = vsel %vm284_vm0, %v1198_v2, %v1281_v20  ;;  %v1209_v3 = vld [vmem:[#allocation3 + $0xe8] sm:$0xff]  ;;  %v1192_v20 = vld [vmem:[#allocation3 + $0x60] sm:$0xff] }
 0x34d   :  { %1391 = vst [vmem:[%s2502_s6 + $0x98] sm:$0xff] %v1359_v21  ;;  %1390 = vst [vmem:[%s2502_s6 + $0x90] sm:$0xff] %v1358_v4 }
 0x34f   :  { %v1249_v23 = vpop.permute.xlu1 %1248  ;;  %v1247_v6 = vpop.permute.xlu0 %1246 }
 0x350   :  { %v1342_v7 = vsel %vm284_vm0, %v1182_v5, %v1249_v23  ;;  %v1341_v24 = vsel %vm284_vm0, %v1181_v22, %v1247_v6  ;;  %v1193_v23 = vld [vmem:[#allocation3 + $0x68] sm:$0xff] }
 0x351   :  { %1374 = vst [vmem:[%s2502_s6 + $0x10] sm:$0xff] %v1342_v7  ;;  %1373 = vst [vmem:[%s2502_s6 + $0x8] sm:$0xff] %v1341_v24  ;;  %v1194_v24 = vld [vmem:[#allocation3 + $0x70] sm:$0xff] }
 0x353   :  { %v1251_v9 = vpop.permute.xlu1 %1250  ;;  %v1285_v44 = vpop.permute.xlu0 %1284 }
 0x354   :  { %v1343_v26 = vsel %vm284_vm0, %v1183_v25, %v1251_v9  ;;  %v1360_v27 = vsel %vm284_vm0, %v1200_v8, %v1285_v44  ;;  %v1195_v9 = vld [vmem:[#allocation3 + $0x78] sm:$0xff] }
 0x355   :  { %1375 = vst [vmem:[%s2502_s6 + $0x18] sm:$0xff] %v1343_v26  ;;  %1392 = vst [vmem:[%s2502_s6 + $0xa0] sm:$0xff] %v1360_v27  ;;  %v1196_v27 = vld [vmem:[#allocation3 + $0x80] sm:$0xff] }
 0x357   :  { %v1287_v52 = vpop.permute.xlu1 %1286  ;;  %v1253_v10 = vpop.permute.xlu0 %1252 }
 0x358   :  { %v1361_v11 = vsel %vm284_vm0, %v1201_v46, %v1287_v52  ;;  %v1344_v56 = vsel %vm284_vm0, %v1184_v49, %v1253_v10  ;;  %v1197_v52 = vld [vmem:[#allocation3 + $0x88] sm:$0xff]  ;;  %v1210_v10 = vld [vmem:[#allocation3 + $0xf0] sm:$0xff] }
 0x359   :  { %1393 = vst [vmem:[%s2502_s6 + $0xa8] sm:$0xff] %v1361_v11  ;;  %1376 = vst [vmem:[%s2502_s6 + $0x20] sm:$0xff] %v1344_v56 }
 0x35b   :  { %v1255_v60 = vpop.permute.xlu1 %1254  ;;  %v1289_v33 = vpop.permute.xlu0 %1288 }
 0x35c   :  { %v1345_v37 = vsel %vm284_vm0, %v1185_v28, %v1255_v60  ;;  %v1362_v41 = vsel %vm284_vm0, %v1202_v29, %v1289_v33  ;;  %v1211_v60 = vld [vmem:[#allocation3 + $0xf8] sm:$0xff] }
 0x35d   :  { %1377 = vst [vmem:[%s2502_s6 + $0x28] sm:$0xff] %v1345_v37  ;;  %1394 = vst [vmem:[%s2502_s6 + $0xb0] sm:$0xff] %v1362_v41 }
 0x35f   :  { %v1291_v58 = vpop.permute.xlu1 %1290  ;;  %v1257_v35 = vpop.permute.xlu0 %1256 }
 0x360   :  { %v1363_v43 = vsel %vm284_vm0, %v1203_v45, %v1291_v58  ;;  %v1346_v47 = vsel %vm284_vm0, %v1186_v51, %v1257_v35 }
 0x361   :  { %1395 = vst [vmem:[%s2502_s6 + $0xb8] sm:$0xff] %v1363_v43  ;;  %1378 = vst [vmem:[%s2502_s6 + $0x30] sm:$0xff] %v1346_v47 }
 0x363   :  { %v1259_v39 = vpop.permute.xlu1 %1258  ;;  %v1293_v16 = vpop.permute.xlu0 %1292 }
 0x364   :  { %v1347_v17 = vsel %vm284_vm0, %v1187_v54, %v1259_v39  ;;  %v1364_v14 = vsel %vm284_vm0, %v1204_v63, %v1293_v16 }
 0x365   :  { %1379 = vst [vmem:[%s2502_s6 + $0x38] sm:$0xff] %v1347_v17  ;;  %1396 = vst [vmem:[%s2502_s6 + $0xc0] sm:$0xff] %v1364_v14 }
 0x367   :  { %v1295_v48 = vpop.permute.xlu1 %1294  ;;  %v1261_v12 = vpop.permute.xlu0 %1260 }
 0x368   :  { %v1365_v31 = vsel %vm284_vm0, %v1205_v15, %v1295_v48  ;;  %v1348_v42 = vsel %vm284_vm0, %v1188_v30, %v1261_v12 }
 0x369   :  { %1397 = vst [vmem:[%s2502_s6 + $0xc8] sm:$0xff] %v1365_v31  ;;  %1380 = vst [vmem:[%s2502_s6 + $0x40] sm:$0xff] %v1348_v42 }
 0x36b   :  { %v1263_v38 = vpop.permute.xlu1 %1262  ;;  %v1297_v36 = vpop.permute.xlu0 %1296 }
 0x36c   :  { %v1349_v40 = vsel %vm284_vm0, %v1189_v13, %v1263_v38  ;;  %v1366_v57 = vsel %vm284_vm0, %v1206_v34, %v1297_v36 }
 0x36d   :  { %1381 = vst [vmem:[%s2502_s6 + $0x48] sm:$0xff] %v1349_v40  ;;  %1398 = vst [vmem:[%s2502_s6 + $0xd0] sm:$0xff] %v1366_v57 }
 0x36f   :  { %v1299_v32 = vpop.permute.xlu1 %1298  ;;  %v1265_v50 = vpop.permute.xlu0 %1264 }
 0x370   :  { %v1367_v53 = vsel %vm284_vm0, %v1207_v59, %v1299_v32  ;;  %v1350_v62 = vsel %vm284_vm0, %v1190_v61, %v1265_v50 }
 0x371   :  { %1399 = vst [vmem:[%s2502_s6 + $0xd8] sm:$0xff] %v1367_v53  ;;  %1382 = vst [vmem:[%s2502_s6 + $0x50] sm:$0xff] %v1350_v62 }
 0x373   :  { %v1267_v18 = vpop.permute.xlu1 %1266  ;;  %v1301_v19 = vpop.permute.xlu0 %1300 }
 0x374   :  { %v1351_v55 = vsel %vm284_vm0, %v1191_v0, %v1267_v18  ;;  %v1368_v2 = vsel %vm284_vm0, %v1208_v1, %v1301_v19 }
 0x375   :  { %1383 = vst [vmem:[%s2502_s6 + $0x58] sm:$0xff] %v1351_v55  ;;  %1400 = vst [vmem:[%s2502_s6 + $0xe0] sm:$0xff] %v1368_v2 }
 0x377   :  { %v1303_v21 = vpop.permute.xlu1 %1302  ;;  %v1269_v4 = vpop.permute.xlu0 %1268 }
 0x378   :  { %v1369_v5 = vsel %vm284_vm0, %v1209_v3, %v1303_v21  ;;  %v1352_v22 = vsel %vm284_vm0, %v1192_v20, %v1269_v4 }
 0x379   :  { %1401 = vst [vmem:[%s2502_s6 + $0xe8] sm:$0xff] %v1369_v5  ;;  %1384 = vst [vmem:[%s2502_s6 + $0x60] sm:$0xff] %v1352_v22 }
 0x37b   :  { %v1271_v6 = vpop.permute.xlu1 %1270 }
 0x37c   :  { %v1353_v7 = vsel %vm284_vm0, %v1193_v23, %v1271_v6 }
 0x37d   :  { %1385 = vst [vmem:[%s2502_s6 + $0x68] sm:$0xff] %v1353_v7 }
 0x37f   :  { %v1273_v25 = vpop.permute.xlu0 %1272 }
 0x380   :  { %v1354_v8 = vsel %vm284_vm0, %v1194_v24, %v1273_v25 }
 0x381   :  { %1386 = vst [vmem:[%s2502_s6 + $0x70] sm:$0xff] %v1354_v8 }
 0x383   :  { %v1275_v44 = vpop.permute.xlu1 %1274 }
 0x384   :  { %v1355_v26 = vsel %vm284_vm0, %v1195_v9, %v1275_v44 }
 0x385   :  { %1387 = vst [vmem:[%s2502_s6 + $0x78] sm:$0xff] %v1355_v26 }
 0x387   :  { %v1277_v46 = vpop.permute.xlu0 %1276 }
 0x388   :  { %v1356_v49 = vsel %vm284_vm0, %v1196_v27, %v1277_v46 }
 0x389   :  { %1388 = vst [vmem:[%s2502_s6 + $0x80] sm:$0xff] %v1356_v49 }
 0x38b   :  { %v1279_v11 = vpop.permute.xlu1 %1278  ;;  %v1305_v56 = vpop.permute.xlu0 %1304 }
 0x38c   :  { %v1357_v28 = vsel %vm284_vm0, %v1197_v52, %v1279_v11  ;;  %v1370_v29 = vsel %vm284_vm0, %v1210_v10, %v1305_v56 }
 0x38d   :  { %1389 = vst [vmem:[%s2502_s6 + $0x88] sm:$0xff] %v1357_v28  ;;  %1402 = vst [vmem:[%s2502_s6 + $0xf0] sm:$0xff] %v1370_v29 }
 0x38f   :  { %v1307_v33 = vpop.permute.xlu1 %1306 }
 0x390   :  { %v1371_v37 = vsel %vm284_vm0, %v1211_v60, %v1307_v33 }
 0x391   :  { %1403 = vst [vmem:[%s2502_s6 + $0xf8] sm:$0xff] %v1371_v37 }
 0x392   :  { %1408 = vsyncmov [#allocation4] }
 0x395   :  { %s1409_s21 = vpop.sfrf %1408 }
 0x396   :  { %p1502_p0 = scmp.ne.s32.totalorder %s1409_s21, 0 }
 0x398   :  { %1413 = shalt.err (%p1502_p0)  }

</bundles_post_ra>
